<compile_context>
chip_gen: v5e
topology: v5e:2x2
jax: 0.10.0
libtpu: 0.0.40
codegen_flags: <defaults>
</compile_context>

<pallas_src>
import jax
import jax.numpy as jnp
import numpy as np
from jax.experimental import pallas as pl
from jax.experimental.pallas import tpu as pltpu

# ----------------------------- small config ---------------------------------
B = 2            # batch
C = 3            # in_chans
T = 4            # num_frames
H = W = 16       # img_size
PS = 8           # patch_size
TPS = 2          # temporal_patch_size
D = 32           # embed_dim

T_DIM = T // TPS              # temporal patches   = 2
H_DIM = H // PS               # spatial patch rows = 2
W_DIM = W // PS               # spatial patch cols = 2
L = T_DIM * H_DIM * W_DIM     # tokens per sample (num_patches) = 8
K = C * TPS * PS * PS         # flattened patch dim = 384 (= 3 * 128 lanes)


# ----------------------------- Pallas kernel --------------------------------
def patch_embed_kernel(p_ref, w_ref, pb_ref, o_ref):
    """out = P @ W + (pos_embed + conv_bias) for one sample.

    p_ref : (L, K)  im2col patch rows for this grid step's sample
    w_ref : (K, D)  flattened Conv3d weight   (constant index_map -> resident)
    pb_ref: (L, D)  pos-embed + bias, f32     (constant index_map -> resident)
    o_ref : (L, D)  written at native D=32 (no lane padding)
    """
    acc = jnp.dot(p_ref[...], w_ref[...], preferred_element_type=jnp.float32)
    o_ref[...] = (acc + pb_ref[...]).astype(o_ref.dtype)


def patch_embed_pallas(patches, w_flat, pos_bias):
    """patches: (B, L, K), w_flat: (K, D), pos_bias: (L, D) -> (B, L, D) f32."""
    b, l, k = patches.shape
    d = w_flat.shape[1]
    bytes_accessed = int(patches.size * patches.dtype.itemsize
                         + w_flat.size * w_flat.dtype.itemsize
                         + pos_bias.size * pos_bias.dtype.itemsize
                         + b * l * d * 4)
    return pl.pallas_call(
        patch_embed_kernel,
        out_shape=jax.ShapeDtypeStruct((b, l, d), jnp.float32),
        grid=(b,),
        in_specs=[
            pl.BlockSpec((None, l, k), lambda i: (i, 0, 0)),  # new sample per step
            pl.BlockSpec((k, d), lambda i: (0, 0)),           # resident weight
            pl.BlockSpec((l, d), lambda i: (0, 0)),           # resident pos+bias
        ],
        out_specs=pl.BlockSpec((None, l, d), lambda i: (i, 0, 0)),
        compiler_params=pltpu.CompilerParams(
            dimension_semantics=("parallel",),                # v7x: shard B over 2 TCs
            vmem_limit_bytes=32 * 1024 * 1024,                # explicit; safe on v7x 64 MiB
            allow_input_fusion=[True, False, False],          # fuse im2col into operand 0
        ),
        cost_estimate=pl.CostEstimate(
            flops=2 * b * l * k * d, transcendentals=0,
            bytes_accessed=bytes_accessed),
    )(patches, w_flat, pos_bias)


# ------------------------------ JAX glue -------------------------------------
def extract_patches(x, temporal_patch_size, patch_size, dtype=jnp.float32):
    """(B, C, T, H, W) -> (B, L, K); token order (t,h,w), feature order (c,kt,kh,kw).

    Exactly matches Conv3d(kernel=stride).flatten(2).transpose(1,2)'s im2col.
    One XLA transpose fusion; allow_input_fusion on the pallas_call lets XLA
    fuse this producer into the kernel operand instead of a separate HBM copy.
    The compute-dtype cast is folded into the same fusion (free), not a
    standalone per-call astype pass.
    """
    b, c, t, h, w = x.shape
    td, hd, wd = t // temporal_patch_size, h // patch_size, w // patch_size
    xr = x.reshape(b, c, td, temporal_patch_size, hd, patch_size, wd, patch_size)
    xr = xr.transpose(0, 2, 4, 6, 1, 3, 5, 7)   # (B, t, h, w, C, kt, kh, kw)
    k = c * temporal_patch_size * patch_size * patch_size
    return xr.reshape(b, td * hd * wd, k).astype(dtype)


def build_pos_bias(pos_spatial, pos_temporal, conv_bias):
    """Factorized pos-embed (module.get_pos_embedding at native patch_dims) with
    the Conv3d bias folded in. Shape (L, D) — NOT tiled over batch; the kernel
    reuses the single VMEM-resident copy for every sample."""
    t_dim = pos_temporal.shape[1]
    hw = pos_spatial.shape[1]
    spatial = jnp.tile(pos_spatial, (1, t_dim, 1))             # .repeat(1, t, 1)
    temporal = jnp.repeat(pos_temporal, hw, axis=1)            # repeat_interleave
    return (spatial + temporal)[0] + conv_bias.reshape(1, -1)  # (L, D)


def vit_forward(x, params, *, compute_dtype=jnp.float32):
    """VisionTransformer.forward for this config (num_tokens=-1, frozen_backbone=-1)."""
    patches = extract_patches(x, TPS, PS, dtype=compute_dtype)           # (B, L, K)
    pos_bias = build_pos_bias(params["pos_spatial"], params["pos_temporal"],
                              params["bias"])                             # (L, D)
    w = params["w_flat"].astype(compute_dtype)   # no-op at f32; pre-cast at real scale
    tokens = patch_embed_pallas(patches, w, pos_bias)                     # (B, L, D)
    b, _, d = tokens.shape
    cls = jnp.broadcast_to(params["cls_token"], (b, 1, d))                # cls_token.expand
    x_full = jnp.concatenate([cls, tokens], axis=1)                       # (B, L+1, D)
    # pos_drop is p=0 (identity); blocks is an empty ModuleList; norm is Identity.
    # TODO(synk): `blocks=None` in this instantiation -> no attention/MLP stack exists.
    cls_out = x_full[:, 0]                                                # forward_tail
    return cls_out, x_full


# ------------------------------ main ------------------------------------------
if __name__ == "__main__":
    key = jax.random.PRNGKey(0)
    k_x, k_w, k_b, k_cls, k_ps, k_pt = jax.random.split(key, 6)

    # deterministic synthetic parameters (shapes follow the module __init__)
    conv_w = jax.random.normal(k_w, (D, C, TPS, PS, PS), jnp.float32) * 0.02
    conv_b = jax.random.normal(k_b, (D,), jnp.float32) * 0.02
    params = {
        # flattened Conv3d weight: (K, D) with K ordered (c, kt, kh, kw)
        "w_flat": conv_w.reshape(D, K).T,
        "bias": conv_b,
        # cls_token / pos embeds are zero-init in the module; small random values
        # here so every add path is exercised (still deterministic).
        "cls_token": jax.random.normal(k_cls, (1, 1, D), jnp.float32) * 0.02,
        "pos_spatial": jax.random.normal(k_ps, (1, H_DIM * W_DIM, D), jnp.float32) * 0.02,
        "pos_temporal": jax.random.normal(k_pt, (1, T_DIM, D), jnp.float32) * 0.02,
    }

    x = jax.random.normal(k_x, (B, C, T, H, W), jnp.float32)

    cls_out, tokens_full = jax.jit(vit_forward)(x, params)
    jax.block_until_ready(cls_out)

    # pure-JAX reference for correctness of the Pallas hot path + tail
    patches_ref = extract_patches(x, TPS, PS)                              # (B, L, K)
    spatial_ref = jnp.tile(params["pos_spatial"], (1, T_DIM, 1))
    temporal_ref = jnp.repeat(params["pos_temporal"], H_DIM * W_DIM, axis=1)
    pos_ref = (spatial_ref + temporal_ref)[0]                              # (L, D)
    ref_tokens = patches_ref @ params["w_flat"] + conv_b[None, None, :] + pos_ref[None]
    ref_full = jnp.concatenate(
        [jnp.broadcast_to(params["cls_token"], (B, 1, D)), ref_tokens], axis=1)
    ref_cls = ref_full[:, 0]

    np.testing.assert_allclose(np.asarray(tokens_full), np.asarray(ref_full),
                               rtol=1e-5, atol=1e-5)
    np.testing.assert_allclose(np.asarray(cls_out), np.asarray(ref_cls),
                               rtol=1e-5, atol=1e-5)

    print("KERNEL_OK")
</pallas_src>

<mosaic_0001>
module attributes {stable_mosaic.version = 11 : i64} {
  func.func @patch_embed_kernel(%arg0: i32, %arg1: memref<1x8x384xf32, #tpu.memory_space<vmem>>, %arg2: memref<384x32xf32, #tpu.memory_space<vmem>>, %arg3: memref<8x32xf32, #tpu.memory_space<vmem>>, %arg4: memref<1x8x32xf32, #tpu.memory_space<vmem>>) attributes {dimension_semantics = [#tpu.dimension_semantics<parallel>], iteration_bounds = array<i64: 2>, scalar_prefetch = 0 : i64, scratch_operands = 0 : i64, tpu.core_type = #tpu.core_type<tc>, window_params = [{transform_indices = @transform_0, window_bounds = array<i64: 1, 8, 384>}, {pipeline_mode = #tpu.pipeline_mode<synchronous>, transform_indices = @transform_1, window_bounds = array<i64: 384, 32>}, {pipeline_mode = #tpu.pipeline_mode<synchronous>, transform_indices = @transform_2, window_bounds = array<i64: 8, 32>}, {transform_indices = @transform_3, window_bounds = array<i64: 1, 8, 32>}]} {
    %c0 = arith.constant 0 : index
    %c0_0 = arith.constant 0 : index
    %c0_1 = arith.constant 0 : index
    %0 = vector.load %arg1[%c0, %c0_0, %c0_1] : memref<1x8x384xf32, #tpu.memory_space<vmem>>, vector<1x8x384xf32>
    %1 = vector.shape_cast %0 : vector<1x8x384xf32> to vector<8x384xf32>
    %c0_2 = arith.constant 0 : index
    %c0_3 = arith.constant 0 : index
    %2 = vector.load %arg2[%c0_2, %c0_3] : memref<384x32xf32, #tpu.memory_space<vmem>>, vector<384x32xf32>
    %cst = arith.constant dense<0.000000e+00> : vector<8x32xf32>
    %3 = tpu.matmul %1, %2, %cst {dimension_numbers = #tpu.dot_dimension_numbers<[1], [0], [0], [1], [0, 0, 1, 1], [], []>} : vector<8x384xf32>, vector<384x32xf32>, vector<8x32xf32> -> vector<8x32xf32>
    %c0_4 = arith.constant 0 : index
    %c0_5 = arith.constant 0 : index
    %4 = vector.load %arg3[%c0_4, %c0_5] : memref<8x32xf32, #tpu.memory_space<vmem>>, vector<8x32xf32>
    %5 = arith.addf %3, %4 : vector<8x32xf32>
    %c0_6 = arith.constant 0 : index
    %c0_7 = arith.constant 0 : index
    %c0_8 = arith.constant 0 : index
    %6 = vector.load %arg4[%c0_6, %c0_7, %c0_8] : memref<1x8x32xf32, #tpu.memory_space<vmem>>, vector<1x8x32xf32>
    %7 = vector.shape_cast %6 : vector<1x8x32xf32> to vector<8x32xf32>
    %8 = vector.shape_cast %5 : vector<8x32xf32> to vector<1x8x32xf32>
    tpu.vector_store %arg4[%c0_6, %c0_7, %c0_8], %8 {strides = array<i32>} : memref<1x8x32xf32, #tpu.memory_space<vmem>>, vector<1x8x32xf32>,
    return
  }
  func.func @transform_0(%arg0: i32) -> (i32, i32, i32) {
    %c0_i32 = arith.constant 0 : i32
    %c0_i32_0 = arith.constant 0 : i32
    %c0_i32_1 = arith.constant 0 : i32
    return %arg0, %c0_i32, %c0_i32_0 : i32, i32, i32
  }
  func.func @transform_1(%arg0: i32) -> (i32, i32) {
    %c0_i32 = arith.constant 0 : i32
    %c0_i32_0 = arith.constant 0 : i32
    %c0_i32_1 = arith.constant 0 : i32
    return %c0_i32, %c0_i32_0 : i32, i32
  }
  func.func @transform_2(%arg0: i32) -> (i32, i32) {
    %c0_i32 = arith.constant 0 : i32
    %c0_i32_0 = arith.constant 0 : i32
    %c0_i32_1 = arith.constant 0 : i32
    return %c0_i32, %c0_i32_0 : i32, i32
  }
  func.func @transform_3(%arg0: i32) -> (i32, i32, i32) {
    %c0_i32 = arith.constant 0 : i32
    %c0_i32_0 = arith.constant 0 : i32
    %c0_i32_1 = arith.constant 0 : i32
    return %arg0, %c0_i32, %c0_i32_0 : i32, i32, i32
  }
}

</mosaic_0001>

<bundles_post_ra>
// kernel: vit_forward.1
= control target key start
LH: loop header
LB: loop body
LE: loop exit
PB: predicated region body
PF: predicated region fallthrough
CT: control target
= control target key end

     0   :  { %s382_s12 = smov 0   ;;  %s554_s0 = inlined_call_operand.vmem [shape: f32[2,8,384], index: 0, kind: input, shape index: {}]   ;;  %s555_s1 = inlined_call_operand.vmem [shape: f32[384,32], index: 1, kind: input, shape index: {}]   ;;  %s556_s2 = inlined_call_operand.vmem [shape: f32[8,32], index: 2, kind: input, shape index: {}]   ;;  %s557_s3 = inlined_call_operand.vmem [shape: f32[2,8,32], index: 3, kind: output, shape index: {}]  }
   0x1 LB: > { %s336_s13 = sadd.s32 4294967295, %s360_s12   ;;  %p340_p0 = scmp.ge.s32.totalorder %s360_s12, 1  ;;  %s360_s12 = sphi %s382_s12, %s13_s12  }
   0x2   : > { %p137_p1 = scmp.lt.s32.totalorder %s360_s12, 3 }
   0x4   : > { %p138_p2 = pnand %p340_p0, %p137_p1 }
   0x5   : > { %p160_p3 = scmp.lt.s32.totalorder (!%p138_p2), %s336_s13, 1 }
   0x6   : > { %141 = sbr.rel (%p138_p2) target bundleno = 178 (0xb2), region = 32 }
   0xb   : > { %v219_v0 = vld [vmem:[%s555_s1 + $0x178] sm:$0xff]  ;;  %v218_v2 = vld [vmem:[%s555_s1 + $0x170] sm:$0xff]  ;;  %v217_v5 = vld [vmem:[%s555_s1 + $0x168] sm:$0xff]  ;;  %s559_s13 = smov (!%p160_p3, %s336_s13), 1  ;;  %vm281_vm0 = vcmask 261120  }
   0xc   : > { %v187_v1 = vld [vmem:[%s555_s1 + $0x78] sm:$0xff]  ;;  %261 = vmatpush.msra.mxu2 %v219_v0  ;;  %v186_v3 = vld [vmem:[%s555_s1 + $0x70] sm:$0xff]  ;;  %v185_v6 = vld [vmem:[%s555_s1 + $0x68] sm:$0xff]  ;;  %s345_s15 = smul.u32 24, %s559_s13  ;;  %s342_s16 = sshll.u32 %s559_s13, 3 }
   0xd   : > { %221 = vmatpush.msra.mxu0 %v187_v1  ;;  %v203_v4 = vld [vmem:[%s555_s1 + $0xf8] sm:$0xff]  ;;  %v202_v7 = vld [vmem:[%s555_s1 + $0xf0] sm:$0xff]  ;;  %v201_v8 = vld [vmem:[%s555_s1 + $0xe8] sm:$0xff]  ;;  %s168_s19 = scalar_lea.vmem %s557_s3, %s342_s16 }
   0xe   : > { %241 = vmatpush.msra.mxu1 %v203_v4  ;;  %262 = vmatpush.msra.mxu2 %v218_v2  ;;  %v216_v9 = vld [vmem:[%s555_s1 + $0x160] sm:$0xff]  ;;  %v215_v12 = vld [vmem:[%s555_s1 + $0x158] sm:$0xff]  ;;  %v214_v15 = vld [vmem:[%s555_s1 + $0x150] sm:$0xff]  ;;  %s164_s30 = scalar_lea.vmem %s554_s0, %s345_s15 }
   0xf   : > { %222 = vmatpush.msra.mxu0 %v186_v3  ;;  %v184_v10 = vld [vmem:[%s555_s1 + $0x60] sm:$0xff]  ;;  %v183_v13 = vld [vmem:[%s555_s1 + $0x58] sm:$0xff]  ;;  %v182_v16 = vld [vmem:[%s555_s1 + $0x50] sm:$0xff] }
  0x10   : > { %242 = vmatpush.msra.mxu1 %v202_v7  ;;  %263 = vmatpush.msra.mxu2 %v217_v5  ;;  %v200_v11 = vld [vmem:[%s555_s1 + $0xe0] sm:$0xff]  ;;  %v199_v14 = vld [vmem:[%s555_s1 + $0xd8] sm:$0xff]  ;;  %v198_v17 = vld [vmem:[%s555_s1 + $0xd0] sm:$0xff] }
  0x11   : > { %223 = vmatpush.msra.mxu0 %v185_v6  ;;  %v213_v18 = vld [vmem:[%s555_s1 + $0x148] sm:$0xff]  ;;  %v212_v21 = vld [vmem:[%s555_s1 + $0x140] sm:$0xff]  ;;  %v211_v24 = vld [vmem:[%s555_s1 + $0x138] sm:$0xff] }
  0x12   : > { %243 = vmatpush.msra.mxu1 %v201_v8  ;;  %264 = vmatpush.msra.mxu2 %v216_v9  ;;  %v181_v19 = vld [vmem:[%s555_s1 + $0x48] sm:$0xff]  ;;  %v180_v22 = vld [vmem:[%s555_s1 + $0x40] sm:$0xff]  ;;  %v179_v25 = vld [vmem:[%s555_s1 + $0x38] sm:$0xff] }
  0x13   : > { %224 = vmatpush.msra.mxu0 %v184_v10  ;;  %v197_v20 = vld [vmem:[%s555_s1 + $0xc8] sm:$0xff]  ;;  %v196_v23 = vld [vmem:[%s555_s1 + $0xc0] sm:$0xff]  ;;  %v195_v26 = vld [vmem:[%s555_s1 + $0xb8] sm:$0xff] }
  0x14   : > { %244 = vmatpush.msra.mxu1 %v200_v11  ;;  %265 = vmatpush.msra.mxu2 %v215_v12  ;;  %v210_v27 = vld [vmem:[%s555_s1 + $0x130] sm:$0xff]  ;;  %v209_v30 = vld [vmem:[%s555_s1 + $0x128] sm:$0xff]  ;;  %v208_v33 = vld [vmem:[%s555_s1 + $0x120] sm:$0xff] }
  0x15   : > { %225 = vmatpush.msra.mxu0 %v183_v13  ;;  %v178_v28 = vld [vmem:[%s555_s1 + $0x30] sm:$0xff]  ;;  %v177_v31 = vld [vmem:[%s555_s1 + $0x28] sm:$0xff]  ;;  %v176_v34 = vld [vmem:[%s555_s1 + $0x20] sm:$0xff] }
  0x16   : > { %245 = vmatpush.msra.mxu1 %v199_v14  ;;  %266 = vmatpush.msra.mxu2 %v214_v15  ;;  %v194_v29 = vld [vmem:[%s555_s1 + $0xb0] sm:$0xff]  ;;  %v193_v32 = vld [vmem:[%s555_s1 + $0xa8] sm:$0xff]  ;;  %v192_v35 = vld [vmem:[%s555_s1 + $0xa0] sm:$0xff] }
  0x17   : > { %226 = vmatpush.msra.mxu0 %v182_v16  ;;  %v207_v36 = vld [vmem:[%s555_s1 + $0x118] sm:$0xff]  ;;  %v206_v39 = vld [vmem:[%s555_s1 + $0x110] sm:$0xff]  ;;  %v205_v42 = vld [vmem:[%s555_s1 + $0x108] sm:$0xff] }
  0x18   : > { %246 = vmatpush.msra.mxu1 %v198_v17  ;;  %267 = vmatpush.msra.mxu2 %v213_v18  ;;  %v175_v37 = vld [vmem:[%s555_s1 + $0x18] sm:$0xff]  ;;  %v174_v40 = vld [vmem:[%s555_s1 + $0x10] sm:$0xff]  ;;  %v173_v43 = vld [vmem:[%s555_s1 + $0x8] sm:$0xff] }
  0x19   : > { %227 = vmatpush.msra.mxu0 %v181_v19  ;;  %v191_v38 = vld [vmem:[%s555_s1 + $0x98] sm:$0xff]  ;;  %v190_v41 = vld [vmem:[%s555_s1 + $0x90] sm:$0xff]  ;;  %v189_v44 = vld [vmem:[%s555_s1 + $0x88] sm:$0xff] }
  0x1a   : > { %247 = vmatpush.msra.mxu1 %v197_v20  ;;  %268 = vmatpush.msra.mxu2 %v212_v21  ;;  %v204_v45 = vld [vmem:[%s555_s1 + $0x100] sm:$0xff]  ;;  %v171_v47 = vld [vmem:[%s164_s30 + $0x10] sm:$0xff]  ;;  %v170_v50 = vld [vmem:[%s164_s30 + $0x8] sm:$0xff] }
  0x1b   : > { %228 = vmatpush.msra.mxu0 %v180_v22  ;;  %v172_v46 = vld [vmem:[%s555_s1] sm:$0xff] }
  0x1c   : > { %248 = vmatpush.msra.mxu1 %v196_v23  ;;  %269 = vmatpush.msra.mxu2 %v211_v24  ;;  %v169_v48 = vld [vmem:[%s164_s30] sm:$0xff] }
  0x1d   : > { %229 = vmatpush.msra.mxu0 %v179_v25  ;;  %v188_v49 = vld [vmem:[%s555_s1 + $0x80] sm:$0xff] }
  0x1e   : > { %249 = vmatpush.msra.mxu1 %v195_v26  ;;  %270 = vmatpush.msra.mxu2 %v210_v27  ;;  %v220_v51 = vld [vmem:[%s556_s2] sm:$0xff] }
  0x1f   : > { %230 = vmatpush.msra.mxu0 %v178_v28 }
  0x20   : > { %250 = vmatpush.msra.mxu1 %v194_v29  ;;  %271 = vmatpush.msra.mxu2 %v209_v30 }
  0x21   : > { %231 = vmatpush.msra.mxu0 %v177_v31 }
  0x22   : > { %251 = vmatpush.msra.mxu1 %v193_v32  ;;  %272 = vmatpush.msra.mxu2 %v208_v33 }
  0x23   : > { %232 = vmatpush.msra.mxu0 %v176_v34 }
  0x24   : > { %252 = vmatpush.msra.mxu1 %v192_v35  ;;  %273 = vmatpush.msra.mxu2 %v207_v36 }
  0x25   : > { %233 = vmatpush.msra.mxu0 %v175_v37 }
  0x26   : > { %253 = vmatpush.msra.mxu1 %v191_v38  ;;  %274 = vmatpush.msra.mxu2 %v206_v39 }
  0x27   : > { %234 = vmatpush.msra.mxu0 %v174_v40 }
  0x28   : > { %254 = vmatpush.msra.mxu1 %v190_v41  ;;  %275 = vmatpush.msra.mxu2 %v205_v42 }
  0x29   : > { %235 = vmatpush.msra.mxu0 %v173_v43 }
  0x2a   : > { %255 = vmatpush.msra.mxu1 %v189_v44  ;;  %276 = vmatpush.msra.mxu2 %v204_v45 }
  0x2b   : > { %236 = vmatpush.msra.mxu0 %v172_v46  ;;  %277 = vmatmul.f32.vlgmr.msra.gmra.mxu2 %v171_v47 }
  0x2c   : > { %237 = vmatmul.f32.vlgmr.msra.gmra.mxu0 %v169_v48  ;;  %256 = vmatpush.msra.mxu1 %v188_v49 }
  0x2d   : > { %257 = vmatmul.f32.vlgmr.msra.gmra.mxu1 %v170_v50 }
  0xa9   : > { %v238_v52 = vpop.f32.mrf.mxu0 }
  0xaa   : > { %v239_v53 = vadd.f32 %v238_v52, %v220_v51  ;;  %v258_v54 = vpop.f32.mrf.mxu1 }
  0xac   : > { %v259_v55 = vadd.f32 %v258_v54, %v239_v53 }
  0xae   : > { %v278_v56 = vpop.f32.mrf.mxu2 }
  0xaf   : > { %v279_v57 = vadd.f32 %v278_v56, %v259_v55 }
  0xb1   : > { %282 = vst.msk [vmem:[%s168_s19] sm:$0xff] %vm281_vm0, %v279_v57 }
  0xb2 PF: > { %s13_s12 = sadd.s32 1, %s360_s12  }
  0xb3   : > { %p10_p4 = scmp.ge.s32.totalorder %s13_s12, 4  }
  0xb5   :  { %12 = sbr.rel (!%p10_p4) target bundleno = 1 (0x1), region = 62 }

</bundles_post_ra>
